<compile_context>
chip_gen: v7x
topology: tpu7x:2x2x1
jax: 0.10.0
libtpu: 0.0.40
codegen_flags: <defaults>
</compile_context>

<pallas_src>
import jax
import jax.numpy as jnp
from jax.experimental import pallas as pl
from jax.experimental.pallas import tpu as pltpu

_LANE = 128     # TPU lane width: pad OUT up to a multiple of this
_TILE_B = 128   # batch tile for the batched path (multiple of 8; matches v5e MXU)


def _linear_sub_relu_kernel(x_ref, w_ref, o_ref):
    # x_ref: [tb, IN], w_ref: [IN, OUT_P], o_ref: [tb, OUT_P]
    z = jnp.dot(x_ref[...], w_ref[...], preferred_element_type=jnp.float32)
    o_ref[...] = jnp.maximum(z - 3.14, 0.0).astype(o_ref.dtype)


def prepare_weight(weight):
    """One-time (init-time) prep of the PyTorch Linear weight [OUT, IN]:
    transpose to [IN, OUT] and zero-pad OUT up to a multiple of 128 lanes."""
    out_features, in_features = weight.shape
    out_p = ((out_features + _LANE - 1) // _LANE) * _LANE
    w_t = weight.T.astype(jnp.float32)                 # [IN, OUT]
    if out_p != out_features:
        w_t = jnp.pad(w_t, ((0, 0), (0, out_p - out_features)))
    return w_t                                         # [IN, OUT_P]


def model_forward(x, w_prepared, out_features):
    """relu(x @ W^T - 3.14); x: [B, IN] f32, w_prepared: [IN, OUT_P] f32."""
    B, IN = x.shape
    OUT_P = w_prepared.shape[1]

    cost = pl.CostEstimate(
        flops=2 * B * IN * OUT_P,
        transcendentals=0,
        bytes_accessed=(x.size + w_prepared.size + B * OUT_P) * 4,
    )

    if B <= _TILE_B:
        # Latency path: single kernel invocation, no grid, no pipeline
        # scaffolding — whole operands are VMEM-resident.
        out_p = pl.pallas_call(
            _linear_sub_relu_kernel,
            out_shape=jax.ShapeDtypeStruct((B, OUT_P), jnp.float32),
            in_specs=[
                pl.BlockSpec(memory_space=pltpu.MemorySpace.VMEM),
                pl.BlockSpec(memory_space=pltpu.MemorySpace.VMEM),
            ],
            out_specs=pl.BlockSpec(memory_space=pltpu.MemorySpace.VMEM),
            cost_estimate=cost,
        )(x, w_prepared)
    else:
        # Batched path: tile B; the small weight is the same block every step,
        # so it is DMA'd once and stays resident in VMEM.
        out_p = pl.pallas_call(
            _linear_sub_relu_kernel,
            out_shape=jax.ShapeDtypeStruct((B, OUT_P), jnp.float32),
            grid=(pl.cdiv(B, _TILE_B),),
            in_specs=[
                pl.BlockSpec((_TILE_B, IN), lambda i: (i, 0)),
                pl.BlockSpec((IN, OUT_P), lambda i: (0, 0)),
            ],
            out_specs=pl.BlockSpec((_TILE_B, OUT_P), lambda i: (i, 0)),
            compiler_params=pltpu.CompilerParams(
                dimension_semantics=("parallel",),
            ),
            cost_estimate=cost,
        )(x, w_prepared)

    # Drop the zero-padded lanes.
    return out_p[:, :out_features]


if __name__ == "__main__":
    key = jax.random.PRNGKey(0)
    kx, kw = jax.random.split(key)

    # Input consistent with the module: x1 = torch.randn(1, 32)
    x = jax.random.normal(kx, (1, 32), dtype=jnp.float32)

    # Deterministic init of Linear(32, 64, bias=False) weight: shape [64, 32]
    # (uniform in [-1/sqrt(32), 1/sqrt(32)] like PyTorch's default init)
    bound = 1.0 / jnp.sqrt(32.0)
    weight = jax.random.uniform(
        kw, (64, 32), dtype=jnp.float32, minval=-bound, maxval=bound
    )

    # One-time weight prep (outside the per-call hot path).
    w_prepared = prepare_weight(weight)

    out = model_forward(x, w_prepared, out_features=64)
    out = jax.block_until_ready(out)

    # Reference check in plain JAX
    ref = jnp.maximum(x @ weight.T - 3.14, 0.0)
    assert out.shape == (1, 64)
    assert jnp.allclose(out, ref, atol=1e-5, rtol=1e-5)

    print("KERNEL_OK")
</pallas_src>

<mosaic_0001>
module attributes {stable_mosaic.version = 11 : i64} {
  func.func @_linear_sub_relu_kernel(%arg0: memref<1x32xf32, #tpu.memory_space<vmem>>, %arg1: memref<32x128xf32, #tpu.memory_space<vmem>>, %arg2: memref<1x128xf32, #tpu.memory_space<vmem>>) attributes {dimension_semantics = [], scalar_prefetch = 0 : i64, scratch_operands = 0 : i64, tpu.core_type = #tpu.core_type<tc>} {
    %c0 = arith.constant 0 : index
    %c0_0 = arith.constant 0 : index
    %0 = vector.load %arg0[%c0, %c0_0] : memref<1x32xf32, #tpu.memory_space<vmem>>, vector<1x32xf32>
    %c0_1 = arith.constant 0 : index
    %c0_2 = arith.constant 0 : index
    %1 = vector.load %arg1[%c0_1, %c0_2] : memref<32x128xf32, #tpu.memory_space<vmem>>, vector<32x128xf32>
    %cst = arith.constant dense<0.000000e+00> : vector<1x128xf32>
    %2 = tpu.matmul %0, %1, %cst {dimension_numbers = #tpu.dot_dimension_numbers<[1], [0], [0], [1], [0, 0, 1, 1], [], []>} : vector<1x32xf32>, vector<32x128xf32>, vector<1x128xf32> -> vector<1x128xf32>
    %cst_3 = arith.constant 3.140000e+00 : f32
    %3 = vector.broadcast %cst_3 : f32 to vector<1x128xf32>
    %4 = arith.subf %2, %3 : vector<1x128xf32>
    %cst_4 = arith.constant 0.000000e+00 : f32
    %5 = vector.broadcast %cst_4 : f32 to vector<1x128xf32>
    %6 = arith.maximumf %4, %5 : vector<1x128xf32>
    %c0_5 = arith.constant 0 : index
    %c0_6 = arith.constant 0 : index
    %7 = vector.load %arg2[%c0_5, %c0_6] : memref<1x128xf32, #tpu.memory_space<vmem>>, vector<1x128xf32>
    tpu.vector_store %arg2[%c0_5, %c0_6], %6 {strides = array<i32>} : memref<1x128xf32, #tpu.memory_space<vmem>>, vector<1x128xf32>,
    return
  }
}

</mosaic_0001>

<bundles_post_ra>
// kernel: tpu_custom_call.1
= control target key start
LH: loop header
LB: loop body
LE: loop exit
PB: predicated region body
PF: predicated region fallthrough
CT: control target
= control target key end

     0   :  { %7 = vsyncpa [#allocation3], 0  ;;  %s306_s0 = inlined_call_operand.hbm [shape: f32[1,32], index: 0, kind: input, shape index: {}]   ;;  %s307_s1 = inlined_call_operand.hbm [shape: f32[32,128], index: 1, kind: input, shape index: {}]   ;;  %s308_s2 = inlined_call_operand.hbm [shape: f32[1,128], index: 2, kind: output, shape index: {}]  }
   0x1   :  { %8 = vsyncpa [#allocation6], 0 }
   0x2   :  { %9 = vsyncpa [#allocation4], 0  ;;  %s240_s9 = smov [#allocation2]   ;;  %s241_s11 = smov [#allocation5]  }
   0x3   :  { %s16_s10 = sshll.u32 %s240_s9, 4  ;;  %s25_s12 = sshll.u32 %s241_s11, 4  ;;  %s17_s10 = int_to_ptr.vmem [resolvable:$true] %s16_s10  ;;  %s263_s12 = int_to_ptr.vmem [resolvable:$true] %s25_s12 }
   0x4   :  { %s168_s15 = scalar_lea.hbm %s306_s0, 16 }
   0x5   :  { %p169_p0 = scmp.ne.s32.totalorder %s306_s0, %s168_s15  ;;  %p172_p1 = scmp.lt.u32.totalorder %s168_s15, %s306_s0 }
   0x7   :  { %p174_p2 = pnand %p172_p1, %p169_p0 }
   0x9   :  { %177 = shalt.err (!%p174_p2)
}
   0xa   :  { %s178_s20 = scalar_lea.vmem %s17_s10, 16  ;;  %s182_s21 = scalar_lea.vmem %s17_s10, 32 }
   0xb   :  { %p179_p3 = scmp.ne.s32.totalorder %s17_s10, %s178_s20  ;;  %p183_p4 = scmp.lt.s32.totalorder %s17_s10, %s17_s10 }
   0xc   :  { %p184_p5 = scmp.lt.s32.totalorder %s182_s21, %s178_s20 }
   0xe   :  { %p185_p6 = por %p184_p5, %p183_p4 }
  0x10   :  { %p186_p7 = pnand %p185_p6, %p179_p3 }
  0x12   :  { %189 = shalt.err (!%p186_p7)
}
  0x13   :  { %19 = dma.hbm_to_vmem [thread:$0]  %s306_s0, 16, %s17_s10, [#allocation3]  }
  0x14   :  { %s190_s26 = scalar_lea.hbm %s307_s1, 512 }
  0x15   :  { %p191_p8 = scmp.ne.s32.totalorder %s307_s1, %s190_s26  ;;  %p194_p9 = scmp.lt.u32.totalorder %s190_s26, %s307_s1 }
  0x17   :  { %p196_p10 = pnand %p194_p9, %p191_p8 }
  0x19   :  { %199 = shalt.err (!%p196_p10)
}
  0x1a   :  { %s200_s3 = scalar_lea.vmem %s263_s12, 512  ;;  %p205_p12 = scmp.lt.s32.totalorder %s263_s12, %s263_s12 }
  0x1b   :  { %p201_p11 = scmp.ne.s32.totalorder %s263_s12, %s200_s3  ;;  %p206_p13 = scmp.lt.s32.totalorder %s200_s3, %s200_s3 }
  0x1d   :  { %p207_p0 = por %p206_p13, %p205_p12 }
  0x1f   :  { %p208_p1 = pnand %p207_p0, %p201_p11 }
  0x21   :  { %211 = shalt.err (!%p208_p1)
}
  0x22   :  { %s242_s0 = smov 128   ;;  %s243_s4 = smov 8  }
  0x23   :  { %31 = dma.hbm_to_vmem [thread:$0]  %s307_s1, 512, %s263_s12, [#allocation6], %s242_s0, %s242_s0, %s243_s4  }
  0x24   :  { %234 = dma.done.wait [#allocation3], 16  }
  0x25   :  { %235 = vsyncadd [#allocation3], 4294967280 }
  0x26   :  { %236 = dma.done.wait [#allocation6], 512  }
  0x27   :  { %237 = vsyncadd [#allocation6], 4294966784  ;;  %v244_v0 = vmov 0.0|0.0   ;;  %vm245_vm0 = vmmov 0   ;;  %v246_v1 = vmov 0.0   ;;  %v39_v2 = vld [vmem:[#allocation5] sm:$0xff] }
  0x28   :  { %154 = vmatprep.subr.bf16.mxu0 %v244_v0  ;;  %151 = vmatprep.mubr.msk.f32.mxu0 %vm245_vm0, %v246_v1  ;;  %v40_v3 = vld [vmem:[#allocation5 + $0x8] sm:$0xff]  ;;  %v41_v4 = vld [vmem:[#allocation5 + $0x10] sm:$0xff]  ;;  %v42_v6 = vld [vmem:[#allocation5 + $0x18] sm:$0xff]  ;;  %vm43_vm1 = vcmask 261120   ;;  %s247_s1 = smov [#allocation7]  }
  0x29   :  { %v155_v5 = vpack.c.bf16 %v40_v3, %v39_v2  ;;  %v158_v7 = vpack.c.bf16 %v42_v6, %v41_v4  ;;  %v38_v8 = vld [vmem:[#allocation2] sm:$0x1]  ;;  %s126_s7 = sshll.u32 %s247_s1, 4  ;;  %s127_s7 = int_to_ptr.vmem [resolvable:$true] %s126_s7 }
  0x2a   :  { %s212_s8 = scalar_lea.vmem %s127_s7, 16  ;;  %s216_s9 = scalar_lea.vmem %s127_s7, 32 }
  0x2b   :  { %156 = vmatpush3.bf16.msra.mxu0 %v155_v5  ;;  %p213_p2 = scmp.ne.s32.totalorder %s127_s7, %s212_s8  ;;  %p217_p3 = scmp.lt.s32.totalorder %s127_s7, %s127_s7 }
  0x2c   :  { %157 = vmatprep.subr.bf16.mxu0 %v244_v0  ;;  %p218_p4 = scmp.lt.s32.totalorder %s216_s9, %s212_s8 }
  0x2e   :  { %p219_p5 = por %p218_p4, %p217_p3 }
  0x2f   :  { %159 = vmatpush3.bf16.msra.mxu0 %v158_v7 }
  0x30   :  { %p220_p6 = pnand %p219_p5, %p213_p2 }
  0x32   :  { %152 = vmatmul.mubr.msk.f32.vlgmr.msra.gmra.mrb[0].mxu0 %vm43_vm1, %v38_v8 }
 0x105   :  { %v113_v9 = vpop.f32.mrb[0].mxu0 }
 0x106   :  { %v137_v10 = vadd.f32 -3.14, %v113_v9  ;;  %v153_v11 = vpop.f32.mrb[1].mxu0 }
 0x108   :  { %v118_v12 = vmax.f32 %v137_v10, 0.0 }
 0x10a   :  { %119 = vst [vmem:[#allocation7] sm:$0x1] %v118_v12 }
 0x10b   :  { %223 = shalt.err (!%p220_p6)
}
 0x10c   :  { %s224_s12 = scalar_lea.hbm %s308_s2, 16 }
 0x10d   :  { %p225_p7 = scmp.ne.s32.totalorder %s308_s2, %s224_s12  ;;  %p228_p8 = scmp.lt.u32.totalorder %s224_s12, %s308_s2 }
 0x10f   :  { %p230_p9 = pnand %p228_p8, %p225_p7 }
 0x111   :  { %233 = shalt.err (!%p230_p9)
}
 0x112   :  { %129 = dma.vmem_to_hbm [thread:$0]  %s127_s7, 16, %s308_s2, [#allocation4]  }
 0x113   :  { %238 = dma.done.wait [#allocation4], 16  }
 0x114   :  { %239 = vsyncadd [#allocation4], 4294967280 }
 0x115   :  { %133 = vsyncpa [#allocation3], 1 }
 0x116   :  { %134 = vsyncpa [#allocation6], 1 }
 0x117   :  { %135 = vsyncpa [#allocation4], 1 }

</bundles_post_ra>
